<compile_context>
chip_gen: v6e
topology: v6e:2x2x1
jax: 0.10.0
libtpu: 0.0.40
codegen_flags: <defaults>
</compile_context>

<pallas_src>
import jax
import jax.numpy as jnp
from jax.experimental import pallas as pl
from jax.experimental.pallas import tpu as pltpu


def _naive_nn_kernel(x_ref, w1_ref, b1_ref, w2_ref, b2_ref, o_ref):
    # x_ref:  (TILE_R, PW)   packed tokens x packed channels (lane-dense)
    # w1_ref: (PW, PW)       block-diag(W1^T)   -- VMEM resident
    # b1_ref: (1, PW)        tiled bias, f32
    # w2_ref: (PW, PW)       block-diag(W2^T)   -- VMEM resident
    # b2_ref: (1, PW)        tiled bias, f32
    x = x_ref[...]
    h = jnp.dot(x, w1_ref[...], preferred_element_type=jnp.float32) + b1_ref[...]
    h = jnp.maximum(h, 0.0)
    h = h.astype(x_ref.dtype)  # bf16 inputs: feed the second MXU pass in bf16
    y = jnp.dot(h, w2_ref[...], preferred_element_type=jnp.float32) + b2_ref[...]
    o_ref[...] = y.astype(o_ref.dtype)


def _round_up(x, m):
    return (x + m - 1) // m * m


def naive_nn_forward(path, w1, b1, w2, b2, *, tile_rows=4096):
    """path: (B, L, W); w1, w2: (W, W) Conv1d(k=1) weights (out, in); b1, b2: (W,)."""
    B, L, W = path.shape
    T = B * L

    # Lane-dense packing: P consecutive tokens share one 128-lane row.
    # The reshape is free (row-major contiguous), no extra HBM transpose pass.
    lanes = 128
    P = lanes // W if (W <= lanes and lanes % W == 0) else 1
    PW = P * W

    # Row tiling: multiple of 8 sublanes; single padding pass so the grid
    # divides exactly (zero-pad rows produce finite garbage, sliced off after).
    R0 = pl.cdiv(T, P)
    tr = min(tile_rows, _round_up(R0, 8))
    r_pad = _round_up(R0, tr)
    T_pad = r_pad * P

    x = path.reshape(T, W)
    if T_pad != T:
        x = jnp.pad(x, ((0, T_pad - T), (0, 0)))
    xp = x.reshape(r_pad, PW)

    # Block-diagonal weights: each of the P packed token segments sees W^T.
    eye = jnp.eye(P, dtype=jnp.float32)
    w1_blk = jnp.kron(eye, w1.T.astype(jnp.float32)).astype(path.dtype)   # (PW, PW)
    w2_blk = jnp.kron(eye, w2.T.astype(jnp.float32)).astype(path.dtype)   # (PW, PW)
    b1r = jnp.tile(b1.astype(jnp.float32), P).reshape(1, PW)
    b2r = jnp.tile(b2.astype(jnp.float32), P).reshape(1, PW)

    elt = path.dtype.itemsize
    bytes_accessed = 2 * r_pad * PW * elt + 2 * PW * PW * elt + 2 * PW * 4
    flops = 2 * (2 * r_pad * PW * PW)  # two block-diag matmuls per row tile

    grid = (r_pad // tr,)
    out = pl.pallas_call(
        _naive_nn_kernel,
        out_shape=jax.ShapeDtypeStruct((r_pad, PW), path.dtype),
        grid=grid,
        in_specs=[
            pl.BlockSpec((tr, PW), lambda i: (i, 0)),   # streamed token tiles
            pl.BlockSpec((PW, PW), lambda i: (0, 0)),   # resident weights
            pl.BlockSpec((1, PW), lambda i: (0, 0)),
            pl.BlockSpec((PW, PW), lambda i: (0, 0)),
            pl.BlockSpec((1, PW), lambda i: (0, 0)),
        ],
        out_specs=pl.BlockSpec((tr, PW), lambda i: (i, 0)),
        compiler_params=pltpu.CompilerParams(
            dimension_semantics=("parallel",),          # megacore sharding on v7x
            vmem_limit_bytes=32 * 1024 * 1024,          # safe on v5e/v6e/v7x
        ),
        cost_estimate=pl.CostEstimate(
            flops=flops, transcendentals=0, bytes_accessed=bytes_accessed),
    )(xp, w1_blk, b1r, w2_blk, b2r)

    return out.reshape(T_pad, W)[:T].reshape(B, L, W)


def _reference_forward(path, w1, b1, w2, b2):
    # Pure-JAX reference mirroring the PyTorch module exactly.
    p = jnp.transpose(path, (0, 2, 1))                        # (B, W, L)
    h = jnp.einsum("ow,bwl->bol", w1, p) + b1[None, :, None]  # conv1d k=1
    h = jnp.maximum(h, 0.0)
    y = jnp.einsum("ow,bwl->bol", w2, h) + b2[None, :, None]
    return jnp.transpose(y, (0, 2, 1))                        # (B, L, W)


if __name__ == "__main__":
    B, L, W = 2, 8, 32  # batch, sequence length, width (channels)

    key = jax.random.PRNGKey(0)
    k_x, k_w1, k_b1, k_w2, k_b2 = jax.random.split(key, 5)

    # Deterministic synthetic parameters (shapes match nn.Conv1d(W, W, 1)).
    bound = 1.0 / jnp.sqrt(jnp.float32(W))
    w1 = jax.random.uniform(k_w1, (W, W), jnp.float32, -bound, bound)  # (out, in)
    b1 = jax.random.uniform(k_b1, (W,), jnp.float32, -bound, bound)
    w2 = jax.random.uniform(k_w2, (W, W), jnp.float32, -bound, bound)
    b2 = jax.random.uniform(k_b2, (W,), jnp.float32, -bound, bound)

    path = jax.random.normal(k_x, (B, L, W), jnp.float32)

    fwd = jax.jit(naive_nn_forward)
    out = fwd(path, w1, b1, w2, b2)
    out = jax.block_until_ready(out)

    ref = _reference_forward(path, w1, b1, w2, b2)
    assert out.shape == (B, L, W)
    assert jnp.allclose(out, ref, atol=1e-5, rtol=1e-5)

    print("KERNEL_OK")
</pallas_src>

<mosaic_0001>
module attributes {stable_mosaic.version = 11 : i64} {
  func.func @_naive_nn_kernel(%arg0: i32, %arg1: memref<8x128xf32, #tpu.memory_space<vmem>>, %arg2: memref<128x128xf32, #tpu.memory_space<vmem>>, %arg3: memref<1x128xf32, #tpu.memory_space<vmem>>, %arg4: memref<128x128xf32, #tpu.memory_space<vmem>>, %arg5: memref<1x128xf32, #tpu.memory_space<vmem>>, %arg6: memref<8x128xf32, #tpu.memory_space<vmem>>) attributes {dimension_semantics = [#tpu.dimension_semantics<parallel>], iteration_bounds = array<i64: 1>, scalar_prefetch = 0 : i64, scratch_operands = 0 : i64, tpu.core_type = #tpu.core_type<tc>, window_params = [{transform_indices = @transform_0, window_bounds = array<i64: 8, 128>}, {pipeline_mode = #tpu.pipeline_mode<synchronous>, transform_indices = @transform_1, window_bounds = array<i64: 128, 128>}, {pipeline_mode = #tpu.pipeline_mode<synchronous>, transform_indices = @transform_2, window_bounds = array<i64: 1, 128>}, {pipeline_mode = #tpu.pipeline_mode<synchronous>, transform_indices = @transform_3, window_bounds = array<i64: 128, 128>}, {pipeline_mode = #tpu.pipeline_mode<synchronous>, transform_indices = @transform_4, window_bounds = array<i64: 1, 128>}, {transform_indices = @transform_5, window_bounds = array<i64: 8, 128>}]} {
    %c0 = arith.constant 0 : index
    %c0_0 = arith.constant 0 : index
    %0 = vector.load %arg1[%c0, %c0_0] : memref<8x128xf32, #tpu.memory_space<vmem>>, vector<8x128xf32>
    %c0_1 = arith.constant 0 : index
    %c0_2 = arith.constant 0 : index
    %1 = vector.load %arg2[%c0_1, %c0_2] : memref<128x128xf32, #tpu.memory_space<vmem>>, vector<128x128xf32>
    %cst = arith.constant dense<0.000000e+00> : vector<8x128xf32>
    %2 = tpu.matmul %0, %1, %cst {dimension_numbers = #tpu.dot_dimension_numbers<[1], [0], [0], [1], [0, 0, 1, 1], [], []>} : vector<8x128xf32>, vector<128x128xf32>, vector<8x128xf32> -> vector<8x128xf32>
    %c0_3 = arith.constant 0 : index
    %c0_4 = arith.constant 0 : index
    %3 = vector.load %arg3[%c0_3, %c0_4] : memref<1x128xf32, #tpu.memory_space<vmem>>, vector<1x128xf32>
    %4 = vector.broadcast %3 : vector<1x128xf32> to vector<8x128xf32>
    %5 = arith.addf %2, %4 : vector<8x128xf32>
    %cst_5 = arith.constant 0.000000e+00 : f32
    %6 = vector.broadcast %cst_5 : f32 to vector<8x128xf32>
    %7 = arith.maximumf %5, %6 : vector<8x128xf32>
    %c0_6 = arith.constant 0 : index
    %c0_7 = arith.constant 0 : index
    %8 = vector.load %arg4[%c0_6, %c0_7] : memref<128x128xf32, #tpu.memory_space<vmem>>, vector<128x128xf32>
    %cst_8 = arith.constant dense<0.000000e+00> : vector<8x128xf32>
    %9 = tpu.matmul %7, %8, %cst_8 {dimension_numbers = #tpu.dot_dimension_numbers<[1], [0], [0], [1], [0, 0, 1, 1], [], []>} : vector<8x128xf32>, vector<128x128xf32>, vector<8x128xf32> -> vector<8x128xf32>
    %c0_9 = arith.constant 0 : index
    %c0_10 = arith.constant 0 : index
    %10 = vector.load %arg5[%c0_9, %c0_10] : memref<1x128xf32, #tpu.memory_space<vmem>>, vector<1x128xf32>
    %11 = vector.broadcast %10 : vector<1x128xf32> to vector<8x128xf32>
    %12 = arith.addf %9, %11 : vector<8x128xf32>
    %c0_11 = arith.constant 0 : index
    %c0_12 = arith.constant 0 : index
    %13 = vector.load %arg6[%c0_11, %c0_12] : memref<8x128xf32, #tpu.memory_space<vmem>>, vector<8x128xf32>
    tpu.vector_store %arg6[%c0_11, %c0_12], %12 {strides = array<i32>} : memref<8x128xf32, #tpu.memory_space<vmem>>, vector<8x128xf32>,
    return
  }
  func.func @transform_0(%arg0: i32) -> (i32, i32) {
    %c0_i32 = arith.constant 0 : i32
    %c0_i32_0 = arith.constant 0 : i32
    return %arg0, %c0_i32 : i32, i32
  }
  func.func @transform_1(%arg0: i32) -> (i32, i32) {
    %c0_i32 = arith.constant 0 : i32
    %c0_i32_0 = arith.constant 0 : i32
    %c0_i32_1 = arith.constant 0 : i32
    return %c0_i32, %c0_i32_0 : i32, i32
  }
  func.func @transform_2(%arg0: i32) -> (i32, i32) {
    %c0_i32 = arith.constant 0 : i32
    %c0_i32_0 = arith.constant 0 : i32
    %c0_i32_1 = arith.constant 0 : i32
    return %c0_i32, %c0_i32_0 : i32, i32
  }
  func.func @transform_3(%arg0: i32) -> (i32, i32) {
    %c0_i32 = arith.constant 0 : i32
    %c0_i32_0 = arith.constant 0 : i32
    %c0_i32_1 = arith.constant 0 : i32
    return %c0_i32, %c0_i32_0 : i32, i32
  }
  func.func @transform_4(%arg0: i32) -> (i32, i32) {
    %c0_i32 = arith.constant 0 : i32
    %c0_i32_0 = arith.constant 0 : i32
    %c0_i32_1 = arith.constant 0 : i32
    return %c0_i32, %c0_i32_0 : i32, i32
  }
  func.func @transform_5(%arg0: i32) -> (i32, i32) {
    %c0_i32 = arith.constant 0 : i32
    %c0_i32_0 = arith.constant 0 : i32
    return %arg0, %c0_i32 : i32, i32
  }
}

</mosaic_0001>

<bundles_post_ra>
// kernel: tile.13
= control target key start
LH: loop header
LB: loop body
LE: loop exit
PB: predicated region body
PF: predicated region fallthrough
CT: control target
= control target key end

     0   :  { %s22_s0 = inlined_call_operand.vmem [shape: f32[32], index: 0, kind: input, shape index: {}]   ;;  %s23_s1 = inlined_call_operand.vmem [shape: f32[4,32], index: 1, kind: output, shape index: {}]  }
   0x1   :  { %v4_v0 = vld [vmem:[%s22_s0] ss:$0 sm:$0xff] }
   0x2   :  { %5 = vst [vmem:[%s23_s1] sm:$0xf] %v4_v0 }

// kernel: tile.14
= control target key start
LH: loop header
LB: loop body
LE: loop exit
PB: predicated region body
PF: predicated region fallthrough
CT: control target
= control target key end

     0   :  { %vm8_vm0 = vcmask 261120   ;;  %s40_s8 = smov 32   ;;  %s41_s9 = smov 64   ;;  %vm14_vm1 = vcmask 1048320   ;;  %vm20_vm2 = vcmask 785920   ;;  %vm26_vm3 = vcmask 523520   ;;  %s58_s0 = inlined_call_operand.vmem [shape: f32[4,32], index: 0, kind: input, shape index: {}]   ;;  %s59_s1 = inlined_call_operand.vmem [shape: f32[1,128], index: 1, kind: output, shape index: {}]  }
   0x1   :  { %v5_v0 = vld [vmem:[%s58_s0] sm:$0xf]  ;;  %s39_s0 = smov 96  }
   0x2   :  { %6 = vst [vmem:[#allocation1] sm:$0xf] %v5_v0 }
   0x9   :  { %v11_v1 = vld [vmem:[#allocation1 + $0x3] sm:$0x1]   ;;  %v23_v2 = vld [vmem:[#allocation1 + $0x1] sm:$0x1]   ;;  %v7_v3 = vld [vmem:[#allocation1] sm:$0x1]  }
   0xa   :  { %12 = vrot.lane.b32.xlu0 %v11_v1, %s39_s0  ;;  %24 = vrot.lane.b32.xlu1 %v23_v2, %s40_s8  ;;  %v17_v4 = vld [vmem:[#allocation1 + $0x2] sm:$0x1]   ;;  %9 = vst.msk [vmem:[#allocation0] sm:$0x1] %vm8_vm0, %v7_v3  }
   0xe   :  { %18 = vrot.lane.b32.xlu0 %v17_v4, %s41_s9 }
  0x7c   :  { %v13_v5 = vpop.permute.xlu0 %12   ;;  %v25_v6 = vpop.permute.xlu1 %24  }
  0x7d   :  { %15 = vst.msk [vmem:[#allocation0] sm:$0x1] %vm14_vm1, %v13_v5  }
  0x80   :  { %v19_v7 = vpop.permute.xlu0 %18  }
  0x81   :  { %21 = vst.msk [vmem:[#allocation0] sm:$0x1] %vm20_vm2, %v19_v7  }
  0x82   :  { %27 = vst.msk [vmem:[#allocation0] sm:$0x1] %vm26_vm3, %v25_v6  }
  0x89   :  { %v32_v8 = vld [vmem:[#allocation0] sm:$0x1] }
  0x8a   :  { %35 = vst [vmem:[%s59_s1] sm:$0x1] %v32_v8 }

// kernel: naive_nn_forward.1
= control target key start
LH: loop header
LB: loop body
LE: loop exit
PB: predicated region body
PF: predicated region fallthrough
CT: control target
= control target key end

     0   :  { %v321_v0 = vmov 0.0   ;;  %vm322_vm0 = vmmov 0   ;;  %s495_s1 = inlined_call_operand.vmem [shape: f32[128,128], index: 1, kind: input, shape index: {}]   ;;  %s496_s3 = inlined_call_operand.vmem [shape: f32[128,128], index: 3, kind: input, shape index: {}]   ;;  %s497_s0 = inlined_call_operand.vmem [shape: f32[8,128], index: 0, kind: input, shape index: {}]   ;;  %s498_s2 = inlined_call_operand.vmem [shape: f32[1,128], index: 2, kind: input, shape index: {}]   ;;  %s499_s4 = inlined_call_operand.vmem [shape: f32[1,128], index: 4, kind: input, shape index: {}]   ;;  %s500_s5 = inlined_call_operand.vmem [shape: f32[8,128], index: 5, kind: output, shape index: {}]  }
   0x1   :  { %249 = vmatprep.subr.mxu0 %v321_v0  ;;  %v36_v1 = vld [vmem:[%s495_s1 + $0x78] sm:$0xff]  ;;  %v35_v2 = vld [vmem:[%s495_s1 + $0x70] sm:$0xff]  ;;  %281 = vmatprep.mubr.msk.f32.mxu0 %vm322_vm0, %v321_v0  ;;  %v34_v3 = vld [vmem:[%s495_s1 + $0x68] sm:$0xff] }
   0x2   :  { %250 = vmatpush3.msra.mxu0 %v36_v1  ;;  %284 = vmatprep.subr.mxu1 %v321_v0  ;;  %v33_v4 = vld [vmem:[%s495_s1 + $0x60] sm:$0xff]  ;;  %v130_v5 = vld [vmem:[%s496_s3 + $0x78] sm:$0xff]  ;;  %v129_v7 = vld [vmem:[%s496_s3 + $0x70] sm:$0xff] }
   0x3   :  { %251 = vmatprep.subr.mxu0 %v321_v0  ;;  %316 = vmatprep.mubr.msk.f32.mxu1 %vm322_vm0, %v321_v0  ;;  %v32_v6 = vld [vmem:[%s495_s1 + $0x58] sm:$0xff]  ;;  %v128_v8 = vld [vmem:[%s496_s3 + $0x68] sm:$0xff]  ;;  %v31_v9 = vld [vmem:[%s495_s1 + $0x50] sm:$0xff] }
   0x4   :  { %252 = vmatpush3.msra.mxu0 %v35_v2  ;;  %285 = vmatpush3.msra.mxu1 %v130_v5  ;;  %v127_v10 = vld [vmem:[%s496_s3 + $0x60] sm:$0xff]  ;;  %v30_v11 = vld [vmem:[%s495_s1 + $0x48] sm:$0xff]  ;;  %v126_v12 = vld [vmem:[%s496_s3 + $0x58] sm:$0xff] }
   0x5   :  { %253 = vmatprep.subr.mxu0 %v321_v0  ;;  %286 = vmatprep.subr.mxu1 %v321_v0  ;;  %v29_v13 = vld [vmem:[%s495_s1 + $0x40] sm:$0xff]  ;;  %v125_v14 = vld [vmem:[%s496_s3 + $0x50] sm:$0xff]  ;;  %v28_v15 = vld [vmem:[%s495_s1 + $0x38] sm:$0xff] }
   0x6   :  { %254 = vmatpush3.msra.mxu0 %v34_v3  ;;  %287 = vmatpush3.msra.mxu1 %v129_v7  ;;  %v124_v16 = vld [vmem:[%s496_s3 + $0x48] sm:$0xff]  ;;  %v27_v17 = vld [vmem:[%s495_s1 + $0x30] sm:$0xff]  ;;  %v123_v18 = vld [vmem:[%s496_s3 + $0x40] sm:$0xff] }
   0x7   :  { %255 = vmatprep.subr.mxu0 %v321_v0  ;;  %288 = vmatprep.subr.mxu1 %v321_v0  ;;  %v26_v19 = vld [vmem:[%s495_s1 + $0x28] sm:$0xff]  ;;  %v122_v20 = vld [vmem:[%s496_s3 + $0x38] sm:$0xff]  ;;  %v25_v21 = vld [vmem:[%s495_s1 + $0x20] sm:$0xff] }
   0x8   :  { %256 = vmatpush3.msra.mxu0 %v33_v4  ;;  %289 = vmatpush3.msra.mxu1 %v128_v8  ;;  %v121_v22 = vld [vmem:[%s496_s3 + $0x30] sm:$0xff]  ;;  %v24_v23 = vld [vmem:[%s495_s1 + $0x18] sm:$0xff]  ;;  %v120_v24 = vld [vmem:[%s496_s3 + $0x28] sm:$0xff] }
   0x9   :  { %257 = vmatprep.subr.mxu0 %v321_v0  ;;  %290 = vmatprep.subr.mxu1 %v321_v0  ;;  %v23_v25 = vld [vmem:[%s495_s1 + $0x10] sm:$0xff]  ;;  %v119_v26 = vld [vmem:[%s496_s3 + $0x20] sm:$0xff]  ;;  %v22_v27 = vld [vmem:[%s495_s1 + $0x8] sm:$0xff] }
   0xa   :  { %258 = vmatpush3.msra.mxu0 %v32_v6  ;;  %291 = vmatpush3.msra.mxu1 %v127_v10  ;;  %v118_v28 = vld [vmem:[%s496_s3 + $0x18] sm:$0xff]  ;;  %v21_v29 = vld [vmem:[%s495_s1] sm:$0xff]  ;;  %v117_v31 = vld [vmem:[%s496_s3 + $0x10] sm:$0xff] }
   0xb   :  { %259 = vmatprep.subr.mxu0 %v321_v0  ;;  %292 = vmatprep.subr.mxu1 %v321_v0  ;;  %v20_v30 = vld [vmem:[%s497_s0] sm:$0xff]  ;;  %v116_v32 = vld [vmem:[%s496_s3 + $0x8] sm:$0xff] }
   0xc   :  { %260 = vmatpush3.msra.mxu0 %v31_v9  ;;  %293 = vmatpush3.msra.mxu1 %v126_v12  ;;  %v115_v33 = vld [vmem:[%s496_s3] sm:$0xff] }
   0xd   :  { %261 = vmatprep.subr.mxu0 %v321_v0  ;;  %294 = vmatprep.subr.mxu1 %v321_v0  ;;  %v213_v34 = vld [vmem:[%s498_s2] ss:$0 sm:$0xff] }
   0xe   :  { %262 = vmatpush3.msra.mxu0 %v30_v11  ;;  %295 = vmatpush3.msra.mxu1 %v125_v14  ;;  %v214_v39 = vld [vmem:[%s499_s4] ss:$0 sm:$0xff] }
   0xf   :  { %263 = vmatprep.subr.mxu0 %v321_v0  ;;  %296 = vmatprep.subr.mxu1 %v321_v0 }
  0x10   :  { %264 = vmatpush3.msra.mxu0 %v29_v13  ;;  %297 = vmatpush3.msra.mxu1 %v124_v16 }
  0x11   :  { %265 = vmatprep.subr.mxu0 %v321_v0  ;;  %298 = vmatprep.subr.mxu1 %v321_v0 }
  0x12   :  { %266 = vmatpush3.msra.mxu0 %v28_v15  ;;  %299 = vmatpush3.msra.mxu1 %v123_v18 }
  0x13   :  { %267 = vmatprep.subr.mxu0 %v321_v0  ;;  %300 = vmatprep.subr.mxu1 %v321_v0 }
  0x14   :  { %268 = vmatpush3.msra.mxu0 %v27_v17  ;;  %301 = vmatpush3.msra.mxu1 %v122_v20 }
  0x15   :  { %269 = vmatprep.subr.mxu0 %v321_v0  ;;  %302 = vmatprep.subr.mxu1 %v321_v0 }
  0x16   :  { %270 = vmatpush3.msra.mxu0 %v26_v19  ;;  %303 = vmatpush3.msra.mxu1 %v121_v22 }
  0x17   :  { %271 = vmatprep.subr.mxu0 %v321_v0  ;;  %304 = vmatprep.subr.mxu1 %v321_v0 }
  0x18   :  { %272 = vmatpush3.msra.mxu0 %v25_v21  ;;  %305 = vmatpush3.msra.mxu1 %v120_v24 }
  0x19   :  { %273 = vmatprep.subr.mxu0 %v321_v0  ;;  %306 = vmatprep.subr.mxu1 %v321_v0 }
  0x1a   :  { %274 = vmatpush3.msra.mxu0 %v24_v23  ;;  %307 = vmatpush3.msra.mxu1 %v119_v26 }
  0x1b   :  { %275 = vmatprep.subr.mxu0 %v321_v0  ;;  %308 = vmatprep.subr.mxu1 %v321_v0 }
  0x1c   :  { %276 = vmatpush3.msra.mxu0 %v23_v25  ;;  %309 = vmatpush3.msra.mxu1 %v118_v28 }
  0x1d   :  { %277 = vmatprep.subr.mxu0 %v321_v0  ;;  %310 = vmatprep.subr.mxu1 %v321_v0 }
  0x1e   :  { %278 = vmatpush3.msra.mxu0 %v22_v27  ;;  %311 = vmatpush3.msra.mxu1 %v117_v31 }
  0x1f   :  { %279 = vmatprep.subr.mxu0 %v321_v0  ;;  %312 = vmatprep.subr.mxu1 %v321_v0 }
  0x20   :  { %280 = vmatpush3.msra.mxu0 %v21_v29  ;;  %313 = vmatpush3.msra.mxu1 %v116_v32 }
  0x21   :  { %282 = vmatmul.mubr.f32.vlgmr.msra.gmra.mxu0 %v20_v30  ;;  %314 = vmatprep.subr.mxu1 %v321_v0 }
  0x22   :  { %315 = vmatpush3.msra.mxu1 %v115_v33 }
  0xe1   :  { %v110_v35 = vpop.f32.mrf.mxu0 }
  0xe2   :  { %v111_v36 = vadd.f32 %v213_v34, %v110_v35 }
  0xe3   :  { %v283_v37 = vpop.f32.mrf.mxu0 }
  0xe4   :  { %v114_v38 = vmax.f32 %v111_v36, 0.0 }
  0xe6   :  { %317 = vmatmul.mubr.f32.vlgmr.msra.gmra.mxu1 %v114_v38 }
 0x1a6   :  { %v204_v40 = vpop.f32.mrf.mxu1 }
 0x1a7   :  { %v205_v41 = vadd.f32 %v214_v39, %v204_v40 }
 0x1a8   :  { %v318_v42 = vpop.f32.mrf.mxu1 }
 0x1a9   :  { %208 = vst [vmem:[%s500_s5] sm:$0xff] %v205_v41 }

</bundles_post_ra>
